<compile_context>
chip_gen: v5e
topology: v5e:2x2
jax: 0.10.0
libtpu: 0.0.40
codegen_flags: <defaults>
</compile_context>

<pallas_src>
import functools

import jax
import jax.numpy as jnp
from jax.experimental import pallas as pl
from jax.experimental.pallas import tpu as pltpu


def _make_gcn_kernel(num_supports, order):
    def kernel(x_ref, at_ref, o_ref):
        # x_ref : (1, TC, V, L)           native-layout input tile
        # at_ref: (S, V, V)               stacked, pre-transposed supports (A^T), resident
        # o_ref : (1, T, TC, V, L)        all diffusion terms, already in output layout
        tc, V, L = x_ref.shape[1], x_ref.shape[2], x_ref.shape[3]

        x_in = x_ref[0]                                  # (TC, V, L)
        o_ref[0, 0, :, :, :] = x_in.astype(o_ref.dtype)  # identity term (fused concat)
        x = x_in.astype(jnp.float32)

        t = 1
        for s in range(num_supports):                    # static unroll, S is small
            a_t = at_ref[s].astype(jnp.float32)          # (V, V) = A_s^T  (rows=w, cols=v)
            # hoisted once per support, reused across all orders of the chain
            a_b = jnp.broadcast_to(a_t[None, :, :], (tc, V, V))   # (TC, W, V)
            h = x
            for _ in range(order):                       # diffusion chain in f32, in VMEM
                # batched matmul over channels: result[c, w, l] = sum_v A_s[v, w] * h[c, v, l]
                h = jax.lax.dot_general(
                    a_b, h,
                    dimension_numbers=(((2,), (1,)), ((0,), (0,))),
                    preferred_element_type=jnp.float32)  # (TC, W, L) -> output block layout
                o_ref[0, t, :, :, :] = h.astype(o_ref.dtype)
                t += 1
    return kernel


def _vmem_limit_bytes():
    """Generation-aware scoped-VMEM limit (v5e/v6e: ~70 MiB, v7x: ~35 MiB)."""
    try:
        phys = int(pltpu.get_tpu_info().vmem_capacity_bytes)
    except Exception:
        phys = 64 * 1024 * 1024          # conservative fallback = v7x per-core VMEM
    return int(max(16 * 1024 * 1024, min(int(phys * 0.55), 96 * 1024 * 1024)))


def _choose_tc(C, N, per_chan_bytes, budget_bytes):
    """Largest channel tile that (a) divides C, (b) fits the VMEM budget,
    (c) if possible leaves >= 2 grid steps (keeps v7x's 2nd TensorCore busy)."""
    divisors = [d for d in range(1, C + 1) if C % d == 0]
    fitting = [d for d in divisors if d * per_chan_bytes <= budget_bytes]
    if not fitting:
        return 1
    tc = max(fitting)
    if N * (C // tc) < 2:
        two_tiles = [d for d in fitting if N * (C // d) >= 2]
        if two_tiles:
            tc = max(two_tiles)
    return tc


def gcn_forward(x, support, order=2, out_dtype=None):
    """Forward pass of `gcn`: diffusion over each support + channel concat."""
    N, C, V, L = x.shape
    S = len(support)
    T = 1 + S * order
    out_dtype = x.dtype if out_dtype is None else jnp.dtype(out_dtype)

    # Hoisted once per call: transpose + cast of the (tiny) adjacency matrices.
    at_stack = jnp.stack([a.T for a in support], axis=0).astype(jnp.float32)

    isz_in = jnp.dtype(x.dtype).itemsize
    isz_out = jnp.dtype(out_dtype).itemsize
    vmem_limit = _vmem_limit_bytes()

    # Per-channel-of-tile VMEM footprint: double-buffered in/out blocks plus the
    # in-kernel f32 working set (x cast, chained h, store staging, A^T broadcast row).
    per_chan = (2 * V * L * isz_in            # x block (double buffered)
                + 2 * T * V * L * isz_out     # output block (double buffered)
                + 3 * V * L * 4               # f32 x / h / staging
                + V * V * 4)                  # per-channel broadcast of A^T
    fixed = 2 * S * V * V * 4                 # resident A^T stack (budget 2x for safety)
    budget = max(0, int(vmem_limit * 0.75) - fixed)
    tc = _choose_tc(C, N, per_chan, budget)

    out = pl.pallas_call(
        _make_gcn_kernel(S, order),
        out_shape=jax.ShapeDtypeStruct((N, T, C, V, L), out_dtype),
        grid_spec=pltpu.PrefetchScalarGridSpec(
            num_scalar_prefetch=0,
            grid=(N, C // tc),
            in_specs=[
                pl.BlockSpec((1, tc, V, L), lambda n, c: (n, c, 0, 0)),   # x, native layout
                pl.BlockSpec((S, V, V), lambda n, c: (0, 0, 0)),          # A^T, resident
            ],
            out_specs=pl.BlockSpec((1, T, tc, V, L), lambda n, c: (n, 0, c, 0, 0)),
        ),
        compiler_params=pltpu.CompilerParams(
            dimension_semantics=("parallel", "parallel"),
            vmem_limit_bytes=vmem_limit,
        ),
    )(x, at_stack)

    # (N, T, C, V, L) -> (N, T*C, V, L): collapse of adjacent dims, free (no permute).
    return out.reshape(N, T * C, V, L)


def _gcn_reference(x, support, order=2):
    out = [x]
    for a in support:
        x1 = jnp.einsum('ncvl,vw->ncwl', x, a)
        out.append(x1)
        for _k in range(2, order + 1):
            x2 = jnp.einsum('ncvl,vw->ncwl', x1, a)
            out.append(x2)
            x1 = x2
    return jnp.concatenate(out, axis=1)


if __name__ == "__main__":
    key = jax.random.PRNGKey(0)
    N, C, V, L = 2, 4, 16, 8          # batch, channels, num_nodes, seq_len
    support_len, order = 3, 2

    k_x, *k_sup = jax.random.split(key, 1 + support_len)
    x = jax.random.normal(k_x, (N, C, V, L), dtype=jnp.float32)

    # deterministic synthetic adjacency matrices (row-normalized, non-negative)
    support = [
        jax.nn.softmax(jax.random.normal(ks, (V, V), dtype=jnp.float32), axis=-1)
        for ks in k_sup
    ]

    fwd = jax.jit(functools.partial(gcn_forward, order=order))
    h = jax.block_until_ready(fwd(x, support))

    # sanity checks against plain-JAX reference
    h_ref = _gcn_reference(x, support, order=order)
    assert h.shape == (N, C * (1 + support_len * order), V, L), h.shape
    assert jnp.allclose(h, h_ref, atol=1e-5, rtol=1e-5), float(jnp.max(jnp.abs(h - h_ref)))

    print("KERNEL_OK")
</pallas_src>

<mosaic_0001>
module attributes {stable_mosaic.version = 11 : i64} {
  func.func @kernel(%arg0: i32, %arg1: i32, %arg2: memref<1x4x16x8xf32, #tpu.memory_space<vmem>>, %arg3: memref<3x16x16xf32, #tpu.memory_space<vmem>>, %arg4: memref<1x7x4x16x8xf32, #tpu.memory_space<vmem>>) attributes {dimension_semantics = [#tpu.dimension_semantics<parallel>, #tpu.dimension_semantics<parallel>], iteration_bounds = array<i64: 2, 1>, scalar_prefetch = 0 : i64, scratch_operands = 0 : i64, tpu.core_type = #tpu.core_type<tc>, window_params = [{transform_indices = @transform_0, window_bounds = array<i64: 1, 4, 16, 8>}, {pipeline_mode = #tpu.pipeline_mode<synchronous>, transform_indices = @transform_1, window_bounds = array<i64: 3, 16, 16>}, {transform_indices = @transform_2, window_bounds = array<i64: 1, 7, 4, 16, 8>}]} {
    %c0 = arith.constant 0 : index
    %c0_0 = arith.constant 0 : index
    %c0_1 = arith.constant 0 : index
    %c0_2 = arith.constant 0 : index
    %0 = vector.load %arg2[%c0, %c0_0, %c0_1, %c0_2] : memref<1x4x16x8xf32, #tpu.memory_space<vmem>>, vector<1x4x16x8xf32>
    %1 = vector.shape_cast %0 : vector<1x4x16x8xf32> to vector<4x16x8xf32>
    %c0_3 = arith.constant 0 : index
    %c0_4 = arith.constant 0 : index
    %c0_5 = arith.constant 0 : index
    %c0_6 = arith.constant 0 : index
    %c0_7 = arith.constant 0 : index
    %2 = vector.load %arg4[%c0_3, %c0_4, %c0_5, %c0_6, %c0_7] : memref<1x7x4x16x8xf32, #tpu.memory_space<vmem>>, vector<1x1x4x16x8xf32>
    %3 = vector.shape_cast %2 : vector<1x1x4x16x8xf32> to vector<4x16x8xf32>
    %4 = vector.shape_cast %1 : vector<4x16x8xf32> to vector<1x1x4x16x8xf32>
    tpu.vector_store %arg4[%c0_3, %c0_4, %c0_5, %c0_6, %c0_7], %4 {strides = array<i32>} : memref<1x7x4x16x8xf32, #tpu.memory_space<vmem>>, vector<1x1x4x16x8xf32>,
    %c0_8 = arith.constant 0 : index
    %c0_9 = arith.constant 0 : index
    %c0_10 = arith.constant 0 : index
    %5 = vector.load %arg3[%c0_8, %c0_9, %c0_10] : memref<3x16x16xf32, #tpu.memory_space<vmem>>, vector<1x16x16xf32>
    %6 = vector.shape_cast %5 : vector<1x16x16xf32> to vector<16x16xf32>
    %7 = vector.shape_cast %6 : vector<16x16xf32> to vector<1x16x16xf32>
    %8 = vector.shape_cast %7 : vector<1x16x16xf32> to vector<1x16x16xf32>
    %9 = vector.broadcast %8 : vector<1x16x16xf32> to vector<4x16x16xf32>
    %cst = arith.constant dense<0.000000e+00> : vector<4x16x8xf32>
    %10 = tpu.matmul %9, %1, %cst {dimension_numbers = #tpu.dot_dimension_numbers<[2], [1], [1], [2], [0, 0, 0, 1, 1, 2], [0], [0]>} : vector<4x16x16xf32>, vector<4x16x8xf32>, vector<4x16x8xf32> -> vector<4x16x8xf32>
    %c0_11 = arith.constant 0 : index
    %c1 = arith.constant 1 : index
    %c0_12 = arith.constant 0 : index
    %c0_13 = arith.constant 0 : index
    %c0_14 = arith.constant 0 : index
    %11 = vector.load %arg4[%c0_11, %c1, %c0_12, %c0_13, %c0_14] : memref<1x7x4x16x8xf32, #tpu.memory_space<vmem>>, vector<1x1x4x16x8xf32>
    %12 = vector.shape_cast %11 : vector<1x1x4x16x8xf32> to vector<4x16x8xf32>
    %13 = vector.shape_cast %10 : vector<4x16x8xf32> to vector<1x1x4x16x8xf32>
    tpu.vector_store %arg4[%c0_11, %c1, %c0_12, %c0_13, %c0_14], %13 {strides = array<i32>} : memref<1x7x4x16x8xf32, #tpu.memory_space<vmem>>, vector<1x1x4x16x8xf32>,
    %cst_15 = arith.constant dense<0.000000e+00> : vector<4x16x8xf32>
    %14 = tpu.matmul %9, %10, %cst_15 {dimension_numbers = #tpu.dot_dimension_numbers<[2], [1], [1], [2], [0, 0, 0, 1, 1, 2], [0], [0]>} : vector<4x16x16xf32>, vector<4x16x8xf32>, vector<4x16x8xf32> -> vector<4x16x8xf32>
    %c0_16 = arith.constant 0 : index
    %c2 = arith.constant 2 : index
    %c0_17 = arith.constant 0 : index
    %c0_18 = arith.constant 0 : index
    %c0_19 = arith.constant 0 : index
    %15 = vector.load %arg4[%c0_16, %c2, %c0_17, %c0_18, %c0_19] : memref<1x7x4x16x8xf32, #tpu.memory_space<vmem>>, vector<1x1x4x16x8xf32>
    %16 = vector.shape_cast %15 : vector<1x1x4x16x8xf32> to vector<4x16x8xf32>
    %17 = vector.shape_cast %14 : vector<4x16x8xf32> to vector<1x1x4x16x8xf32>
    tpu.vector_store %arg4[%c0_16, %c2, %c0_17, %c0_18, %c0_19], %17 {strides = array<i32>} : memref<1x7x4x16x8xf32, #tpu.memory_space<vmem>>, vector<1x1x4x16x8xf32>,
    %c1_20 = arith.constant 1 : index
    %c0_21 = arith.constant 0 : index
    %c0_22 = arith.constant 0 : index
    %18 = vector.load %arg3[%c1_20, %c0_21, %c0_22] : memref<3x16x16xf32, #tpu.memory_space<vmem>>, vector<1x16x16xf32>
    %19 = vector.shape_cast %18 : vector<1x16x16xf32> to vector<16x16xf32>
    %20 = vector.shape_cast %19 : vector<16x16xf32> to vector<1x16x16xf32>
    %21 = vector.shape_cast %20 : vector<1x16x16xf32> to vector<1x16x16xf32>
    %22 = vector.broadcast %21 : vector<1x16x16xf32> to vector<4x16x16xf32>
    %cst_23 = arith.constant dense<0.000000e+00> : vector<4x16x8xf32>
    %23 = tpu.matmul %22, %1, %cst_23 {dimension_numbers = #tpu.dot_dimension_numbers<[2], [1], [1], [2], [0, 0, 0, 1, 1, 2], [0], [0]>} : vector<4x16x16xf32>, vector<4x16x8xf32>, vector<4x16x8xf32> -> vector<4x16x8xf32>
    %c0_24 = arith.constant 0 : index
    %c3 = arith.constant 3 : index
    %c0_25 = arith.constant 0 : index
    %c0_26 = arith.constant 0 : index
    %c0_27 = arith.constant 0 : index
    %24 = vector.load %arg4[%c0_24, %c3, %c0_25, %c0_26, %c0_27] : memref<1x7x4x16x8xf32, #tpu.memory_space<vmem>>, vector<1x1x4x16x8xf32>
    %25 = vector.shape_cast %24 : vector<1x1x4x16x8xf32> to vector<4x16x8xf32>
    %26 = vector.shape_cast %23 : vector<4x16x8xf32> to vector<1x1x4x16x8xf32>
    tpu.vector_store %arg4[%c0_24, %c3, %c0_25, %c0_26, %c0_27], %26 {strides = array<i32>} : memref<1x7x4x16x8xf32, #tpu.memory_space<vmem>>, vector<1x1x4x16x8xf32>,
    %cst_28 = arith.constant dense<0.000000e+00> : vector<4x16x8xf32>
    %27 = tpu.matmul %22, %23, %cst_28 {dimension_numbers = #tpu.dot_dimension_numbers<[2], [1], [1], [2], [0, 0, 0, 1, 1, 2], [0], [0]>} : vector<4x16x16xf32>, vector<4x16x8xf32>, vector<4x16x8xf32> -> vector<4x16x8xf32>
    %c0_29 = arith.constant 0 : index
    %c4 = arith.constant 4 : index
    %c0_30 = arith.constant 0 : index
    %c0_31 = arith.constant 0 : index
    %c0_32 = arith.constant 0 : index
    %28 = vector.load %arg4[%c0_29, %c4, %c0_30, %c0_31, %c0_32] : memref<1x7x4x16x8xf32, #tpu.memory_space<vmem>>, vector<1x1x4x16x8xf32>
    %29 = vector.shape_cast %28 : vector<1x1x4x16x8xf32> to vector<4x16x8xf32>
    %30 = vector.shape_cast %27 : vector<4x16x8xf32> to vector<1x1x4x16x8xf32>
    tpu.vector_store %arg4[%c0_29, %c4, %c0_30, %c0_31, %c0_32], %30 {strides = array<i32>} : memref<1x7x4x16x8xf32, #tpu.memory_space<vmem>>, vector<1x1x4x16x8xf32>,
    %c2_33 = arith.constant 2 : index
    %c0_34 = arith.constant 0 : index
    %c0_35 = arith.constant 0 : index
    %31 = vector.load %arg3[%c2_33, %c0_34, %c0_35] : memref<3x16x16xf32, #tpu.memory_space<vmem>>, vector<1x16x16xf32>
    %32 = vector.shape_cast %31 : vector<1x16x16xf32> to vector<16x16xf32>
    %33 = vector.shape_cast %32 : vector<16x16xf32> to vector<1x16x16xf32>
    %34 = vector.shape_cast %33 : vector<1x16x16xf32> to vector<1x16x16xf32>
    %35 = vector.broadcast %34 : vector<1x16x16xf32> to vector<4x16x16xf32>
    %cst_36 = arith.constant dense<0.000000e+00> : vector<4x16x8xf32>
    %36 = tpu.matmul %35, %1, %cst_36 {dimension_numbers = #tpu.dot_dimension_numbers<[2], [1], [1], [2], [0, 0, 0, 1, 1, 2], [0], [0]>} : vector<4x16x16xf32>, vector<4x16x8xf32>, vector<4x16x8xf32> -> vector<4x16x8xf32>
    %c0_37 = arith.constant 0 : index
    %c5 = arith.constant 5 : index
    %c0_38 = arith.constant 0 : index
    %c0_39 = arith.constant 0 : index
    %c0_40 = arith.constant 0 : index
    %37 = vector.load %arg4[%c0_37, %c5, %c0_38, %c0_39, %c0_40] : memref<1x7x4x16x8xf32, #tpu.memory_space<vmem>>, vector<1x1x4x16x8xf32>
    %38 = vector.shape_cast %37 : vector<1x1x4x16x8xf32> to vector<4x16x8xf32>
    %39 = vector.shape_cast %36 : vector<4x16x8xf32> to vector<1x1x4x16x8xf32>
    tpu.vector_store %arg4[%c0_37, %c5, %c0_38, %c0_39, %c0_40], %39 {strides = array<i32>} : memref<1x7x4x16x8xf32, #tpu.memory_space<vmem>>, vector<1x1x4x16x8xf32>,
    %cst_41 = arith.constant dense<0.000000e+00> : vector<4x16x8xf32>
    %40 = tpu.matmul %35, %36, %cst_41 {dimension_numbers = #tpu.dot_dimension_numbers<[2], [1], [1], [2], [0, 0, 0, 1, 1, 2], [0], [0]>} : vector<4x16x16xf32>, vector<4x16x8xf32>, vector<4x16x8xf32> -> vector<4x16x8xf32>
    %c0_42 = arith.constant 0 : index
    %c6 = arith.constant 6 : index
    %c0_43 = arith.constant 0 : index
    %c0_44 = arith.constant 0 : index
    %c0_45 = arith.constant 0 : index
    %41 = vector.load %arg4[%c0_42, %c6, %c0_43, %c0_44, %c0_45] : memref<1x7x4x16x8xf32, #tpu.memory_space<vmem>>, vector<1x1x4x16x8xf32>
    %42 = vector.shape_cast %41 : vector<1x1x4x16x8xf32> to vector<4x16x8xf32>
    %43 = vector.shape_cast %40 : vector<4x16x8xf32> to vector<1x1x4x16x8xf32>
    tpu.vector_store %arg4[%c0_42, %c6, %c0_43, %c0_44, %c0_45], %43 {strides = array<i32>} : memref<1x7x4x16x8xf32, #tpu.memory_space<vmem>>, vector<1x1x4x16x8xf32>,
    return
  }
  func.func @transform_0(%arg0: i32, %arg1: i32) -> (i32, i32, i32, i32) {
    %c0_i32 = arith.constant 0 : i32
    %c0_i32_0 = arith.constant 0 : i32
    %c0_i32_1 = arith.constant 0 : i32
    return %arg0, %arg1, %c0_i32, %c0_i32_0 : i32, i32, i32, i32
  }
  func.func @transform_1(%arg0: i32, %arg1: i32) -> (i32, i32, i32) {
    %c0_i32 = arith.constant 0 : i32
    %c0_i32_0 = arith.constant 0 : i32
    %c0_i32_1 = arith.constant 0 : i32
    %c0_i32_2 = arith.constant 0 : i32
    return %c0_i32, %c0_i32_0, %c0_i32_1 : i32, i32, i32
  }
  func.func @transform_2(%arg0: i32, %arg1: i32) -> (i32, i32, i32, i32, i32) {
    %c0_i32 = arith.constant 0 : i32
    %c0_i32_0 = arith.constant 0 : i32
    %c0_i32_1 = arith.constant 0 : i32
    %c0_i32_2 = arith.constant 0 : i32
    return %arg0, %c0_i32, %arg1, %c0_i32_0, %c0_i32_1 : i32, i32, i32, i32, i32
  }
}

</mosaic_0001>

<bundles_post_ra>
// kernel: gcn_forward.1
= control target key start
LH: loop header
LB: loop body
LE: loop exit
PB: predicated region body
PF: predicated region fallthrough
CT: control target
= control target key end

     0   :  { %s1109_s9 = smov 0   ;;  %s1111_s10 = smov 0   ;;  %s1390_s0 = inlined_call_operand.vmem [shape: f32[2,4,16,8], index: 0, kind: input, shape index: {}]   ;;  %s1391_s1 = inlined_call_operand.vmem [shape: f32[3,16,16], index: 1, kind: input, shape index: {}]   ;;  %s1392_s2 = inlined_call_operand.vmem [shape: f32[2,7,4,16,8], index: 2, kind: output, shape index: {}]  }
   0x1   :  { %s1113_s11 = smov 0  }
   0x2 LB: > { %s24_s12 = sadd.s32 1, %s1088_s10  ;;  %p938_p0 = scmp.ge.s32.totalorder %s1092_s11, 1  ;;  %s1092_s11 = sphi %s1113_s11, %s12_s11   ;;  %s1088_s10 = sphi %s1111_s10, %s1394_s10   ;;  %s1084_s9 = sphi %s1109_s9, %s1393_s9  }
   0x3   : > { %p26_p1 = scmp.ge.s32.totalorder %s24_s12, 2  ;;  %p134_p2 = scmp.lt.s32.totalorder %s1092_s11, 3 }
   0x5   : > { %s1396_s12 = smov (%p26_p1, %s24_s12), 0  ;;  %p135_p3 = pnand %p938_p0, %p134_p2 }
   0x6   : > { %p167_p4 = scmp.lt.s32.totalorder (!%p135_p3), %s1084_s9, 1 }
   0x7   : > { %138 = sbr.rel (%p135_p3) target bundleno = 622 (0x26e), region = 28 }
   0xc   : > { %s1398_s9 = smov (!%p167_p4, %s1084_s9), 1  ;;  %v1133_v0 = vld [vmem:[%s1391_s1] sm:$0xff]  ;;  %vm196_vm0 = vcmask 64512   ;;  %vm207_vm1 = vcmask 130048   ;;  %v206_v9 = vld [vmem:[%s1391_s1 + $0x8] sm:$0xff]  ;;  %v974_v18 = vld [vmem:[%s1391_s1 + $0x10] sm:$0xff] }
   0xd   : > { %s1044_s13 = sshll.u32 %s1398_s9, 6  ;;  %s1045_s14 = smul.u32 448, %s1398_s9  ;;  %v1249_v19 = vld [vmem:[%s1391_s1 + $0x18] sm:$0xff]  ;;  %v1008_v36 = vld [vmem:[%s1391_s1 + $0x20] sm:$0xff]  ;;  %v1009_v37 = vld [vmem:[%s1391_s1 + $0x28] sm:$0xff] }
   0xe   : > { %s175_s17 = scalar_lea.vmem %s1390_s0, %s1044_s13 }
   0xf   : > { %s1138_s22 = scalar_lea.vmem %s1392_s2, %s1045_s14  ;;  %v1140_v1 = vld [vmem:[%s175_s17 + $0x28] sm:$0xff]  ;;  %v1142_v2 = vld [vmem:[%s175_s17 + $0x38] sm:$0xff]  ;;  %v1144_v3 = vld [vmem:[%s175_s17 + $0x20] sm:$0xff] }
  0x10   : > { %202 = vst.msk [vmem:[%s1138_s22 + $0x28] sm:$0xff] %vm196_vm0, %v1140_v1  ;;  %274 = vmatpush.msra.mxu2 %v1140_v1  ;;  %297 = vmatpush.msra.mxu3 %v1142_v2  ;;  %v1151_v4 = vld [vmem:[%s175_s17 + $0x30] sm:$0xff]  ;;  %v1153_v5 = vld [vmem:[%s175_s17 + $0x8] sm:$0xff]  ;;  %v1155_v6 = vld [vmem:[%s175_s17 + $0x18] sm:$0xff] }
  0x11   : > { %204 = vst.msk [vmem:[%s1138_s22 + $0x38] sm:$0xff] %vm196_vm0, %v1142_v2  ;;  %228 = vmatpush.msra.mxu0 %v1153_v5  ;;  %251 = vmatpush.msra.mxu1 %v1155_v6  ;;  %v1162_v7 = vld [vmem:[%s175_s17] sm:$0xff]  ;;  %v1164_v8 = vld [vmem:[%s175_s17 + $0x10] sm:$0xff] }
  0x12   : > { %201 = vst.msk [vmem:[%s1138_s22 + $0x20] sm:$0xff] %vm196_vm0, %v1144_v3  ;;  %275 = vmatpush.msra.mxu2 %v1144_v3  ;;  %298 = vmatpush.msra.mxu3 %v1151_v4 }
  0x13   : > { %203 = vst.msk [vmem:[%s1138_s22 + $0x30] sm:$0xff] %vm196_vm0, %v1151_v4  ;;  %946 = vmatmul.msk.f32.vlgmr.msra.gmra.mxu2 %vm207_vm1, %v1133_v0  ;;  %948 = vmatmul.msk.f32.vlgmr.msra.gmra.mxu3 %vm207_vm1, %v1133_v0 }
  0x14   : > { %198 = vst.msk [vmem:[%s1138_s22 + $0x8] sm:$0xff] %vm196_vm0, %v1153_v5  ;;  %229 = vmatpush.msra.mxu0 %v1162_v7  ;;  %252 = vmatpush.msra.mxu1 %v1164_v8 }
  0x15   : > { %200 = vst.msk [vmem:[%s1138_s22 + $0x18] sm:$0xff] %vm196_vm0, %v1155_v6  ;;  %942 = vmatmul.msk.f32.vlgmr.msra.gmra.mxu0 %vm207_vm1, %v1133_v0  ;;  %944 = vmatmul.msk.f32.vlgmr.msra.gmra.mxu1 %vm207_vm1, %v1133_v0 }
  0x16   : > { %197 = vst.msk [vmem:[%s1138_s22] sm:$0xff] %vm196_vm0, %v1162_v7 }
  0x17   : > { %199 = vst.msk [vmem:[%s1138_s22 + $0x10] sm:$0xff] %vm196_vm0, %v1164_v8 }
  0x1b   : > { %947 = vmatmul.msk.f32.gmra.mxu2 %vm207_vm1, %v206_v9  ;;  %949 = vmatmul.msk.f32.gmra.mxu3 %vm207_vm1, %v206_v9 }
  0x1d   : > { %943 = vmatmul.msk.f32.gmra.mxu0 %vm207_vm1, %v206_v9  ;;  %945 = vmatmul.msk.f32.gmra.mxu1 %vm207_vm1, %v206_v9 }
  0x92   : > { %v231_v10 = vpop.f32.mrf.mxu0  ;;  %v254_v11 = vpop.f32.mrf.mxu1 }
  0x93   : > { %950 = vst.msk [vmem:[%s1138_s22 + $0x40] sm:$0xff] %vm196_vm0, %v231_v10 }
  0x94   : > { %952 = vst.msk [vmem:[%s1138_s22 + $0x50] sm:$0xff] %vm196_vm0, %v254_v11 }
  0x96   : > { %v277_v12 = vpop.f32.mrf.mxu2  ;;  %v300_v13 = vpop.f32.mrf.mxu3 }
  0x97   : > { %954 = vst.msk [vmem:[%s1138_s22 + $0x60] sm:$0xff] %vm196_vm0, %v277_v12 }
  0x98   : > { %956 = vst.msk [vmem:[%s1138_s22 + $0x70] sm:$0xff] %vm196_vm0, %v300_v13 }
  0x9a   : > { %v234_v14 = vpop.f32.mrf.mxu0  ;;  %v257_v15 = vpop.f32.mrf.mxu1 }
  0x9b   : > { %951 = vst.msk [vmem:[%s1138_s22 + $0x48] sm:$0xff] %vm196_vm0, %v234_v14  ;;  %329 = vmatpush.msrb.mxu0 %v234_v14  ;;  %352 = vmatpush.msrb.mxu1 %v257_v15 }
  0x9c   : > { %953 = vst.msk [vmem:[%s1138_s22 + $0x58] sm:$0xff] %vm196_vm0, %v257_v15 }
  0x9d   : > { %330 = vmatpush.msrb.mxu0 %v231_v10  ;;  %353 = vmatpush.msrb.mxu1 %v254_v11 }
  0x9e   : > { %v280_v16 = vpop.f32.mrf.mxu2  ;;  %v303_v17 = vpop.f32.mrf.mxu3  ;;  %958 = vmatmul.msk.f32.vlgmr.msrb.gmra.mxu0 %vm207_vm1, %v1133_v0  ;;  %960 = vmatmul.msk.f32.vlgmr.msrb.gmra.mxu1 %vm207_vm1, %v1133_v0 }
  0x9f   : > { %955 = vst.msk [vmem:[%s1138_s22 + $0x68] sm:$0xff] %vm196_vm0, %v280_v16  ;;  %375 = vmatpush.msrb.mxu2 %v280_v16  ;;  %398 = vmatpush.msrb.mxu3 %v303_v17 }
  0xa0   : > { %957 = vst.msk [vmem:[%s1138_s22 + $0x78] sm:$0xff] %vm196_vm0, %v303_v17  ;;  %439 = vmatpush.msra.mxu0 %v1153_v5  ;;  %462 = vmatpush.msra.mxu1 %v1155_v6 }
  0xa1   : > { %376 = vmatpush.msrb.mxu2 %v277_v12  ;;  %399 = vmatpush.msrb.mxu3 %v300_v13 }
  0xa2   : > { %962 = vmatmul.msk.f32.vlgmr.msrb.gmra.mxu2 %vm207_vm1, %v1133_v0  ;;  %964 = vmatmul.msk.f32.vlgmr.msrb.gmra.mxu3 %vm207_vm1, %v1133_v0 }
  0xa3   : > { %485 = vmatpush.msra.mxu2 %v1140_v1  ;;  %508 = vmatpush.msra.mxu3 %v1142_v2 }
  0xa4   : > { %440 = vmatpush.msra.mxu0 %v1162_v7  ;;  %463 = vmatpush.msra.mxu1 %v1164_v8 }
  0xa5   : > { %486 = vmatpush.msra.mxu2 %v1144_v3  ;;  %509 = vmatpush.msra.mxu3 %v1151_v4 }
  0xa6   : > { %959 = vmatmul.msk.f32.gmra.mxu0 %vm207_vm1, %v206_v9  ;;  %961 = vmatmul.msk.f32.gmra.mxu1 %vm207_vm1, %v206_v9 }
  0xaa   : > { %963 = vmatmul.msk.f32.gmra.mxu2 %vm207_vm1, %v206_v9  ;;  %965 = vmatmul.msk.f32.gmra.mxu3 %vm207_vm1, %v206_v9 }
  0xae   : > { %976 = vmatmul.msk.f32.vlgmr.msra.gmra.mxu0 %vm207_vm1, %v974_v18  ;;  %978 = vmatmul.msk.f32.vlgmr.msra.gmra.mxu1 %vm207_vm1, %v974_v18 }
  0xb2   : > { %980 = vmatmul.msk.f32.vlgmr.msra.gmra.mxu2 %vm207_vm1, %v974_v18  ;;  %982 = vmatmul.msk.f32.vlgmr.msra.gmra.mxu3 %vm207_vm1, %v974_v18 }
  0xb6   : > { %977 = vmatmul.msk.f32.gmra.mxu0 %vm207_vm1, %v1249_v19  ;;  %979 = vmatmul.msk.f32.gmra.mxu1 %vm207_vm1, %v1249_v19 }
  0xba   : > { %981 = vmatmul.msk.f32.gmra.mxu2 %vm207_vm1, %v1249_v19  ;;  %983 = vmatmul.msk.f32.gmra.mxu3 %vm207_vm1, %v1249_v19 }
 0x11b   : > { %v332_v20 = vpop.f32.mrf.mxu0  ;;  %v355_v21 = vpop.f32.mrf.mxu1 }
 0x11c   : > { %966 = vst.msk [vmem:[%s1138_s22 + $0x80] sm:$0xff] %vm196_vm0, %v332_v20 }
 0x11d   : > { %968 = vst.msk [vmem:[%s1138_s22 + $0x90] sm:$0xff] %vm196_vm0, %v355_v21 }
 0x123   : > { %v335_v22 = vpop.f32.mrf.mxu0  ;;  %v358_v23 = vpop.f32.mrf.mxu1 }
 0x124   : > { %967 = vst.msk [vmem:[%s1138_s22 + $0x88] sm:$0xff] %vm196_vm0, %v335_v22 }
 0x125   : > { %v378_v24 = vpop.f32.mrf.mxu2  ;;  %v401_v25 = vpop.f32.mrf.mxu3  ;;  %969 = vst.msk [vmem:[%s1138_s22 + $0x98] sm:$0xff] %vm196_vm0, %v358_v23 }
 0x126   : > { %970 = vst.msk [vmem:[%s1138_s22 + $0xa0] sm:$0xff] %vm196_vm0, %v378_v24 }
 0x127   : > { %972 = vst.msk [vmem:[%s1138_s22 + $0xb0] sm:$0xff] %vm196_vm0, %v401_v25 }
 0x12b   : > { %v442_v26 = vpop.f32.mrf.mxu0  ;;  %v465_v27 = vpop.f32.mrf.mxu1 }
 0x12c   : > { %984 = vst.msk [vmem:[%s1138_s22 + $0xc0] sm:$0xff] %vm196_vm0, %v442_v26 }
 0x12d   : > { %v381_v28 = vpop.f32.mrf.mxu2  ;;  %v404_v29 = vpop.f32.mrf.mxu3  ;;  %986 = vst.msk [vmem:[%s1138_s22 + $0xd0] sm:$0xff] %vm196_vm0, %v465_v27 }
 0x12e   : > { %971 = vst.msk [vmem:[%s1138_s22 + $0xa8] sm:$0xff] %vm196_vm0, %v381_v28 }
 0x12f   : > { %973 = vst.msk [vmem:[%s1138_s22 + $0xb8] sm:$0xff] %vm196_vm0, %v404_v29 }
 0x133   : > { %v445_v30 = vpop.f32.mrf.mxu0  ;;  %v468_v31 = vpop.f32.mrf.mxu1 }
 0x134   : > { %985 = vst.msk [vmem:[%s1138_s22 + $0xc8] sm:$0xff] %vm196_vm0, %v445_v30  ;;  %540 = vmatpush.msrb.mxu0 %v445_v30  ;;  %563 = vmatpush.msrb.mxu1 %v468_v31 }
 0x135   : > { %v488_v32 = vpop.f32.mrf.mxu2  ;;  %v511_v33 = vpop.f32.mrf.mxu3  ;;  %987 = vst.msk [vmem:[%s1138_s22 + $0xd8] sm:$0xff] %vm196_vm0, %v468_v31 }
 0x136   : > { %988 = vst.msk [vmem:[%s1138_s22 + $0xe0] sm:$0xff] %vm196_vm0, %v488_v32  ;;  %541 = vmatpush.msrb.mxu0 %v442_v26  ;;  %564 = vmatpush.msrb.mxu1 %v465_v27 }
 0x137   : > { %990 = vst.msk [vmem:[%s1138_s22 + $0xf0] sm:$0xff] %vm196_vm0, %v511_v33  ;;  %992 = vmatmul.msk.f32.vlgmr.msrb.gmra.mxu0 %vm207_vm1, %v974_v18  ;;  %994 = vmatmul.msk.f32.vlgmr.msrb.gmra.mxu1 %vm207_vm1, %v974_v18 }
 0x138   : > { %650 = vmatpush.msra.mxu0 %v1153_v5  ;;  %673 = vmatpush.msra.mxu1 %v1155_v6 }
 0x13a   : > { %651 = vmatpush.msra.mxu0 %v1162_v7  ;;  %674 = vmatpush.msra.mxu1 %v1164_v8 }
 0x13d   : > { %v491_v34 = vpop.f32.mrf.mxu2  ;;  %v514_v35 = vpop.f32.mrf.mxu3 }
 0x13e   : > { %989 = vst.msk [vmem:[%s1138_s22 + $0xe8] sm:$0xff] %vm196_vm0, %v491_v34  ;;  %586 = vmatpush.msrb.mxu2 %v491_v34  ;;  %609 = vmatpush.msrb.mxu3 %v514_v35 }
 0x13f   : > { %991 = vst.msk [vmem:[%s1138_s22 + $0xf8] sm:$0xff] %vm196_vm0, %v514_v35  ;;  %993 = vmatmul.msk.f32.gmra.mxu0 %vm207_vm1, %v1249_v19  ;;  %995 = vmatmul.msk.f32.gmra.mxu1 %vm207_vm1, %v1249_v19 }
 0x140   : > { %587 = vmatpush.msrb.mxu2 %v488_v32  ;;  %610 = vmatpush.msrb.mxu3 %v511_v33 }
 0x141   : > { %996 = vmatmul.msk.f32.vlgmr.msrb.gmra.mxu2 %vm207_vm1, %v974_v18  ;;  %998 = vmatmul.msk.f32.vlgmr.msrb.gmra.mxu3 %vm207_vm1, %v974_v18 }
 0x142   : > { %696 = vmatpush.msra.mxu2 %v1140_v1  ;;  %719 = vmatpush.msra.mxu3 %v1142_v2 }
 0x144   : > { %697 = vmatpush.msra.mxu2 %v1144_v3  ;;  %720 = vmatpush.msra.mxu3 %v1151_v4 }
 0x147   : > { %1010 = vmatmul.msk.f32.vlgmr.msra.gmra.mxu0 %vm207_vm1, %v1008_v36  ;;  %1012 = vmatmul.msk.f32.vlgmr.msra.gmra.mxu1 %vm207_vm1, %v1008_v36 }
 0x149   : > { %997 = vmatmul.msk.f32.gmra.mxu2 %vm207_vm1, %v1249_v19  ;;  %999 = vmatmul.msk.f32.gmra.mxu3 %vm207_vm1, %v1249_v19 }
 0x14f   : > { %1011 = vmatmul.msk.f32.gmra.mxu0 %vm207_vm1, %v1009_v37  ;;  %1013 = vmatmul.msk.f32.gmra.mxu1 %vm207_vm1, %v1009_v37 }
 0x151   : > { %1014 = vmatmul.msk.f32.vlgmr.msra.gmra.mxu2 %vm207_vm1, %v1008_v36  ;;  %1016 = vmatmul.msk.f32.vlgmr.msra.gmra.mxu3 %vm207_vm1, %v1008_v36 }
 0x159   : > { %1015 = vmatmul.msk.f32.gmra.mxu2 %vm207_vm1, %v1009_v37  ;;  %1017 = vmatmul.msk.f32.gmra.mxu3 %vm207_vm1, %v1009_v37 }
 0x1b4   : > { %v543_v38 = vpop.f32.mrf.mxu0  ;;  %v566_v39 = vpop.f32.mrf.mxu1 }
 0x1b5   : > { %1000 = vst.msk [vmem:[%s1138_s22 + $0x100] sm:$0xff] %vm196_vm0, %v543_v38 }
 0x1b6   : > { %1002 = vst.msk [vmem:[%s1138_s22 + $0x110] sm:$0xff] %vm196_vm0, %v566_v39 }
 0x1bc   : > { %v546_v40 = vpop.f32.mrf.mxu0  ;;  %v569_v41 = vpop.f32.mrf.mxu1 }
 0x1bd   : > { %1001 = vst.msk [vmem:[%s1138_s22 + $0x108] sm:$0xff] %vm196_vm0, %v546_v40 }
 0x1be   : > { %1003 = vst.msk [vmem:[%s1138_s22 + $0x118] sm:$0xff] %vm196_vm0, %v569_v41 }
 0x1c4   : > { %v589_v42 = vpop.f32.mrf.mxu2  ;;  %v612_v43 = vpop.f32.mrf.mxu3 }
 0x1c5   : > { %1004 = vst.msk [vmem:[%s1138_s22 + $0x120] sm:$0xff] %vm196_vm0, %v589_v42  ;;  %v653_v44 = vpop.f32.mrf.mxu0  ;;  %v676_v45 = vpop.f32.mrf.mxu1 }
 0x1c6   : > { %1006 = vst.msk [vmem:[%s1138_s22 + $0x130] sm:$0xff] %vm196_vm0, %v612_v43 }
 0x1c7   : > { %1018 = vst.msk [vmem:[%s1138_s22 + $0x140] sm:$0xff] %vm196_vm0, %v653_v44 }
 0x1c8   : > { %1020 = vst.msk [vmem:[%s1138_s22 + $0x150] sm:$0xff] %vm196_vm0, %v676_v45 }
 0x1cc   : > { %v592_v46 = vpop.f32.mrf.mxu2  ;;  %v615_v47 = vpop.f32.mrf.mxu3 }
 0x1cd   : > { %1005 = vst.msk [vmem:[%s1138_s22 + $0x128] sm:$0xff] %vm196_vm0, %v592_v46  ;;  %v656_v48 = vpop.f32.mrf.mxu0  ;;  %v679_v49 = vpop.f32.mrf.mxu1 }
 0x1ce   : > { %1007 = vst.msk [vmem:[%s1138_s22 + $0x138] sm:$0xff] %vm196_vm0, %v615_v47  ;;  %751 = vmatpush.msrb.mxu0 %v656_v48  ;;  %774 = vmatpush.msrb.mxu1 %v679_v49 }
 0x1cf   : > { %1019 = vst.msk [vmem:[%s1138_s22 + $0x148] sm:$0xff] %vm196_vm0, %v656_v48 }
 0x1d0   : > { %1021 = vst.msk [vmem:[%s1138_s22 + $0x158] sm:$0xff] %vm196_vm0, %v679_v49  ;;  %752 = vmatpush.msrb.mxu0 %v653_v44  ;;  %775 = vmatpush.msrb.mxu1 %v676_v45 }
 0x1d1   : > { %1026 = vmatmul.msk.f32.vlgmr.msrb.gmra.mxu0 %vm207_vm1, %v1008_v36  ;;  %1028 = vmatmul.msk.f32.vlgmr.msrb.gmra.mxu1 %vm207_vm1, %v1008_v36 }
 0x1d4   : > { %v699_v50 = vpop.f32.mrf.mxu2  ;;  %v722_v51 = vpop.f32.mrf.mxu3 }
 0x1d5   : > { %1022 = vst.msk [vmem:[%s1138_s22 + $0x160] sm:$0xff] %vm196_vm0, %v699_v50 }
 0x1d6   : > { %1024 = vst.msk [vmem:[%s1138_s22 + $0x170] sm:$0xff] %vm196_vm0, %v722_v51 }
 0x1d9   : > { %1027 = vmatmul.msk.f32.gmra.mxu0 %vm207_vm1, %v1009_v37  ;;  %1029 = vmatmul.msk.f32.gmra.mxu1 %vm207_vm1, %v1009_v37 }
 0x1dc   : > { %v702_v52 = vpop.f32.mrf.mxu2  ;;  %v725_v53 = vpop.f32.mrf.mxu3 }
 0x1dd   : > { %1023 = vst.msk [vmem:[%s1138_s22 + $0x168] sm:$0xff] %vm196_vm0, %v702_v52  ;;  %797 = vmatpush.msrb.mxu2 %v702_v52  ;;  %820 = vmatpush.msrb.mxu3 %v725_v53 }
 0x1de   : > { %1025 = vst.msk [vmem:[%s1138_s22 + $0x178] sm:$0xff] %vm196_vm0, %v725_v53 }
 0x1df   : > { %798 = vmatpush.msrb.mxu2 %v699_v50  ;;  %821 = vmatpush.msrb.mxu3 %v722_v51 }
 0x1e0   : > { %1030 = vmatmul.msk.f32.vlgmr.msrb.gmra.mxu2 %vm207_vm1, %v1008_v36  ;;  %1032 = vmatmul.msk.f32.vlgmr.msrb.gmra.mxu3 %vm207_vm1, %v1008_v36 }
 0x1e8   : > { %1031 = vmatmul.msk.f32.gmra.mxu2 %vm207_vm1, %v1009_v37  ;;  %1033 = vmatmul.msk.f32.gmra.mxu3 %vm207_vm1, %v1009_v37 }
 0x24e   : > { %v754_v54 = vpop.f32.mrf.mxu0  ;;  %v777_v55 = vpop.f32.mrf.mxu1 }
 0x24f   : > { %1034 = vst.msk [vmem:[%s1138_s22 + $0x180] sm:$0xff] %vm196_vm0, %v754_v54 }
 0x250   : > { %1036 = vst.msk [vmem:[%s1138_s22 + $0x190] sm:$0xff] %vm196_vm0, %v777_v55 }
 0x256   : > { %v757_v56 = vpop.f32.mrf.mxu0  ;;  %v780_v57 = vpop.f32.mrf.mxu1 }
 0x257   : > { %1035 = vst.msk [vmem:[%s1138_s22 + $0x188] sm:$0xff] %vm196_vm0, %v757_v56 }
 0x258   : > { %1037 = vst.msk [vmem:[%s1138_s22 + $0x198] sm:$0xff] %vm196_vm0, %v780_v57 }
 0x263   : > { %v800_v58 = vpop.f32.mrf.mxu2  ;;  %v823_v59 = vpop.f32.mrf.mxu3 }
 0x264   : > { %1038 = vst.msk [vmem:[%s1138_s22 + $0x1a0] sm:$0xff] %vm196_vm0, %v800_v58 }
 0x265   : > { %1040 = vst.msk [vmem:[%s1138_s22 + $0x1b0] sm:$0xff] %vm196_vm0, %v823_v59 }
 0x26b   : > { %v803_v60 = vpop.f32.mrf.mxu2  ;;  %v826_v61 = vpop.f32.mrf.mxu3 }
 0x26c   : > { %1039 = vst.msk [vmem:[%s1138_s22 + $0x1a8] sm:$0xff] %vm196_vm0, %v803_v60 }
 0x26d   : > { %1041 = vst.msk [vmem:[%s1138_s22 + $0x1b8] sm:$0xff] %vm196_vm0, %v826_v61 }
 0x26e PF: > { %s12_s11 = sadd.s32 1, %s1092_s11   ;;  %s1393_s9 = smov %s1088_s10 }
 0x26f   : > { %p9_p5 = scmp.ge.s32.totalorder %s12_s11, 4   ;;  %s1394_s10 = smov %s1396_s12 }
 0x271   :  { %11 = sbr.rel (!%p9_p5) target bundleno = 2 (0x2), region = 66 }

</bundles_post_ra>
